<compile_context>
chip_gen: v5e
topology: v5e:2x2
jax: 0.10.0
libtpu: 0.0.40
codegen_flags: <defaults>
</compile_context>

<pallas_src>
import jax
import jax.numpy as jnp
from jax.experimental import pallas as pl
from jax.experimental.pallas import tpu as pltpu


def adapter_kernel(x_ref, wd_ref, bd_ref, wu_ref, bu_ref, o_ref):
    """One row-tile of the adapter: relu(x @ Wd + bd) @ Wu + bu + x.

    x_ref : (TM, Dp)  input row tile (native dtype, fed to MXU directly)
    wd_ref: (Dp, Hp)  down-projection weight (VMEM-resident across grid steps)
    bd_ref: (1, Hp)   down-projection bias
    wu_ref: (Hp, Dp)  up-projection weight (VMEM-resident)
    bu_ref: (1, Dp)   up-projection bias
    o_ref : (TM, Dp)  output row tile
    """
    x = x_ref[...]

    # Down projection (MXU, f32 accumulate) + bias + ReLU.
    h = jnp.dot(x, wd_ref[...], preferred_element_type=jnp.float32)
    h = jnp.maximum(h + bd_ref[...], 0.0)

    # Up projection: feed the MXU in the weight's dtype (bf16 stays bf16).
    y = jnp.dot(h.astype(wu_ref.dtype), wu_ref[...],
                preferred_element_type=jnp.float32)

    # Fused epilogue: bias + residual in one VPU pass, single downcast.
    y = y + bu_ref[...] + x

    # TODO(synk): dropout is identity at inference; no stochastic masking emitted.
    o_ref[...] = y.astype(o_ref.dtype)


def _round_up(n, m):
    return ((n + m - 1) // m) * m


def _vmem_limits():
    """Generation-aware (limit, tile budget) in bytes."""
    try:
        cap = int(pltpu.get_tpu_info().vmem_capacity_bytes)
    except Exception:
        cap = 64 * 1024 * 1024  # conservative default (v7x per-TC size)
    if cap >= 128 * 1024 * 1024:          # v5e / v6e: 128 MiB physical VMEM
        limit = 100 * 1024 * 1024
    else:                                 # v7x: 64 MiB per TensorCore
        limit = min(32 * 1024 * 1024, max(cap // 2, 16 * 1024 * 1024))
    budget = limit - 4 * 1024 * 1024      # headroom for compiler internal scratch
    return limit, budget


# Flipped to False (once) if the running jax rejects pipeline_mode=pl.Buffered(1).
_SINGLE_BUFFER_WEIGHTS_OK = True


def adapter_forward(x, w_down, b_down, w_up, b_up, *, tm_cap=2048):
    """x: (..., D). Weights: w_down (D,H), b_down (H,), w_up (H,D), b_up (D,)."""
    global _SINGLE_BUFFER_WEIGHTS_OK

    orig_shape = x.shape
    D = orig_shape[-1]
    H = w_down.shape[-1]
    x2d = x.reshape(-1, D)
    M = x2d.shape[0]

    # --- lane-dense padding: H and D rounded up to multiples of 128 ---------
    # Exact math: padded H columns give relu(0+0)=0 with zero w_up rows; padded
    # D columns of x are zero, matching zero w_down rows / zero b_up entries,
    # and the extra output columns are sliced off.
    Hp = _round_up(max(H, 128), 128)
    Dp = _round_up(max(D, 128), 128)
    if Hp != H:
        w_down = jnp.pad(w_down, ((0, 0), (0, Hp - H)))
        b_down = jnp.pad(b_down, ((0, Hp - H),))
        w_up = jnp.pad(w_up, ((0, Hp - H), (0, 0)))
    if Dp != D:
        x2d = jnp.pad(x2d, ((0, 0), (0, Dp - D)))
        w_down = jnp.pad(w_down, ((0, Dp - D), (0, 0)))
        w_up = jnp.pad(w_up, ((0, 0), (0, Dp - D)))
        b_up = jnp.pad(b_up, ((0, Dp - D),))

    bd2d = b_down.reshape(1, Hp)
    bu2d = b_up.reshape(1, Dp)

    itemsize = jnp.dtype(x.dtype).itemsize
    w_itemsize = jnp.dtype(w_down.dtype).itemsize
    vmem_limit, vmem_budget = _vmem_limits()

    def run(single_buffer_weights):
        wb_factor = 1 if single_buffer_weights else 2
        weight_bytes = wb_factor * (2 * Dp * Hp + Hp + Dp) * w_itemsize

        # Per-row VMEM: double-buffered input + output tiles (native dtype),
        # the f32 h (TM x Hp) and y (TM x Dp) temporaries, and the copy of h
        # cast to the weight dtype that feeds the second matmul.
        per_row = 4 * Dp * itemsize + 4 * (Hp + Dp) + Hp * w_itemsize
        avail = vmem_budget - weight_bytes
        if avail < 8 * per_row:
            # TODO(synk): resident-weight tiling doesn't fit; a D-reduction grid
            # axis (tile w_down rows / w_up cols) would be needed for huge D.
            raise ValueError(
                f"Adapter weights ({weight_bytes} B) exceed the VMEM tile budget "
                f"({vmem_budget} B); K-tiled variant not implemented.")

        TM = min(tm_cap, avail // per_row)
        TM = max(8, (TM // 8) * 8)
        TM = min(TM, _round_up(M, 8))
        # Guarantee >= 2 grid steps where possible so the "parallel" axis can
        # engage both TensorCores on v7x (a 1-step grid leaves one TC idle).
        while TM > 8 and pl.cdiv(M, TM) < 2:
            TM = max(8, ((TM // 2) // 8) * 8)
        TM = int(TM)

        Mp = _round_up(M, TM)
        xp = jnp.pad(x2d, ((0, Mp - M), (0, 0))) if Mp != M else x2d
        grid = (Mp // TM,)

        # Constant-index-map operands never change block -> single-buffer them.
        weight_mode = (
            dict(pipeline_mode=pl.Buffered(1)) if single_buffer_weights else {})

        cost = pl.CostEstimate(
            flops=4 * Mp * Dp * Hp,
            transcendentals=0,
            bytes_accessed=2 * Mp * Dp * itemsize
            + (2 * Dp * Hp + Hp + Dp) * w_itemsize,
        )

        return pl.pallas_call(
            adapter_kernel,
            out_shape=jax.ShapeDtypeStruct((Mp, Dp), x.dtype),
            grid_spec=pltpu.PrefetchScalarGridSpec(
                num_scalar_prefetch=0,
                grid=grid,
                in_specs=[
                    pl.BlockSpec((TM, Dp), lambda i: (i, 0)),   # x: streamed rows
                    pl.BlockSpec((Dp, Hp), lambda i: (0, 0), **weight_mode),
                    pl.BlockSpec((1, Hp), lambda i: (0, 0), **weight_mode),
                    pl.BlockSpec((Hp, Dp), lambda i: (0, 0), **weight_mode),
                    pl.BlockSpec((1, Dp), lambda i: (0, 0), **weight_mode),
                ],
                out_specs=pl.BlockSpec((TM, Dp), lambda i: (i, 0)),
            ),
            compiler_params=pltpu.CompilerParams(
                dimension_semantics=("parallel",),   # row tiles independent
                vmem_limit_bytes=vmem_limit,
            ),
            input_output_aliases={0: 0},             # reuse x's HBM buffer
            cost_estimate=cost,
        )(xp, w_down, bd2d, w_up, bu2d)

    if _SINGLE_BUFFER_WEIGHTS_OK:
        try:
            out = run(single_buffer_weights=True)
        except Exception:
            # Older / stricter jax rejecting Buffered(1): fall back once,
            # remember, and keep running with default double-buffered weights.
            _SINGLE_BUFFER_WEIGHTS_OK = False
            out = run(single_buffer_weights=False)
    else:
        out = run(single_buffer_weights=False)

    out = out[:M, :D]
    return out.reshape(orig_shape)


if __name__ == "__main__":
    # Small shapes consistent with the module: x is (batch, seq, dimension).
    batch, seq, dimension, hidden = 2, 8, 32, 16

    key = jax.random.PRNGKey(0)
    x = jax.random.normal(key, (batch, seq, dimension), dtype=jnp.float32)

    # Deterministic parameter init, exactly as the PyTorch module does:
    # every Linear weight/bias filled with 1e-6 (stored here as (in, out)).
    fill = jnp.float32(1e-6)
    w_down = jnp.full((dimension, hidden), fill, dtype=jnp.float32)
    b_down = jnp.full((hidden,), fill, dtype=jnp.float32)
    w_up = jnp.full((hidden, dimension), fill, dtype=jnp.float32)
    b_up = jnp.full((dimension,), fill, dtype=jnp.float32)

    # TODO(synk): layer_normalization=False in the module default; the optional
    # LayerNorm branch is not implemented here.

    y = adapter_forward(x, w_down, b_down, w_up, b_up)
    y = jax.block_until_ready(y)

    # Pure-JAX reference check of the same math.
    h_ref = jnp.maximum(x @ w_down + b_down, 0.0)
    y_ref = h_ref @ w_up + b_up + x
    assert jnp.allclose(y, y_ref, atol=1e-5, rtol=1e-5), "mismatch vs reference"
    assert y.shape == x.shape and y.dtype == x.dtype

    # Second check: row count not a multiple of 8 exercises the M/D padding path.
    x2 = jax.random.normal(jax.random.PRNGKey(1), (3, 7, dimension),
                           dtype=jnp.float32)
    y2 = jax.block_until_ready(adapter_forward(x2, w_down, b_down, w_up, b_up))
    y2_ref = jnp.maximum(x2 @ w_down + b_down, 0.0) @ w_up + b_up + x2
    assert jnp.allclose(y2, y2_ref, atol=1e-5, rtol=1e-5), "mismatch (padded M)"
    assert y2.shape == x2.shape and y2.dtype == x2.dtype

    print("KERNEL_OK")
</pallas_src>

<mosaic_0001>
module attributes {stable_mosaic.version = 11 : i64} {
  func.func @adapter_kernel(%arg0: i32, %arg1: memref<8x128xf32, #tpu.memory_space<vmem>>, %arg2: memref<128x128xf32, #tpu.memory_space<vmem>>, %arg3: memref<1x128xf32, #tpu.memory_space<vmem>>, %arg4: memref<128x128xf32, #tpu.memory_space<vmem>>, %arg5: memref<1x128xf32, #tpu.memory_space<vmem>>, %arg6: memref<8x128xf32, #tpu.memory_space<vmem>>) attributes {dimension_semantics = [#tpu.dimension_semantics<parallel>], iteration_bounds = array<i64: 2>, scalar_prefetch = 0 : i64, scratch_operands = 0 : i64, tpu.core_type = #tpu.core_type<tc>, window_params = [{transform_indices = @transform_0, window_bounds = array<i64: 8, 128>}, {pipeline_mode = #tpu.pipeline_mode<synchronous>, transform_indices = @transform_1, window_bounds = array<i64: 128, 128>}, {pipeline_mode = #tpu.pipeline_mode<synchronous>, transform_indices = @transform_2, window_bounds = array<i64: 1, 128>}, {pipeline_mode = #tpu.pipeline_mode<synchronous>, transform_indices = @transform_3, window_bounds = array<i64: 128, 128>}, {pipeline_mode = #tpu.pipeline_mode<synchronous>, transform_indices = @transform_4, window_bounds = array<i64: 1, 128>}, {transform_indices = @transform_5, window_bounds = array<i64: 8, 128>}]} {
    %c0 = arith.constant 0 : index
    %c0_0 = arith.constant 0 : index
    %0 = vector.load %arg1[%c0, %c0_0] : memref<8x128xf32, #tpu.memory_space<vmem>>, vector<8x128xf32>
    %c0_1 = arith.constant 0 : index
    %c0_2 = arith.constant 0 : index
    %1 = vector.load %arg2[%c0_1, %c0_2] : memref<128x128xf32, #tpu.memory_space<vmem>>, vector<128x128xf32>
    %cst = arith.constant dense<0.000000e+00> : vector<8x128xf32>
    %2 = tpu.matmul %0, %1, %cst {dimension_numbers = #tpu.dot_dimension_numbers<[1], [0], [0], [1], [0, 0, 1, 1], [], []>} : vector<8x128xf32>, vector<128x128xf32>, vector<8x128xf32> -> vector<8x128xf32>
    %c0_3 = arith.constant 0 : index
    %c0_4 = arith.constant 0 : index
    %3 = vector.load %arg3[%c0_3, %c0_4] : memref<1x128xf32, #tpu.memory_space<vmem>>, vector<1x128xf32>
    %4 = vector.broadcast %3 : vector<1x128xf32> to vector<8x128xf32>
    %5 = arith.addf %2, %4 : vector<8x128xf32>
    %cst_5 = arith.constant 0.000000e+00 : f32
    %6 = vector.broadcast %cst_5 : f32 to vector<8x128xf32>
    %7 = arith.maximumf %5, %6 : vector<8x128xf32>
    %c0_6 = arith.constant 0 : index
    %c0_7 = arith.constant 0 : index
    %8 = vector.load %arg4[%c0_6, %c0_7] : memref<128x128xf32, #tpu.memory_space<vmem>>, vector<128x128xf32>
    %cst_8 = arith.constant dense<0.000000e+00> : vector<8x128xf32>
    %9 = tpu.matmul %7, %8, %cst_8 {dimension_numbers = #tpu.dot_dimension_numbers<[1], [0], [0], [1], [0, 0, 1, 1], [], []>} : vector<8x128xf32>, vector<128x128xf32>, vector<8x128xf32> -> vector<8x128xf32>
    %c0_9 = arith.constant 0 : index
    %c0_10 = arith.constant 0 : index
    %10 = vector.load %arg5[%c0_9, %c0_10] : memref<1x128xf32, #tpu.memory_space<vmem>>, vector<1x128xf32>
    %11 = vector.broadcast %10 : vector<1x128xf32> to vector<8x128xf32>
    %12 = arith.addf %9, %11 : vector<8x128xf32>
    %13 = arith.addf %12, %0 : vector<8x128xf32>
    %c0_11 = arith.constant 0 : index
    %c0_12 = arith.constant 0 : index
    %14 = vector.load %arg6[%c0_11, %c0_12] : memref<8x128xf32, #tpu.memory_space<vmem>>, vector<8x128xf32>
    tpu.vector_store %arg6[%c0_11, %c0_12], %13 {strides = array<i32>} : memref<8x128xf32, #tpu.memory_space<vmem>>, vector<8x128xf32>,
    return
  }
  func.func @transform_0(%arg0: i32) -> (i32, i32) {
    %c0_i32 = arith.constant 0 : i32
    %c0_i32_0 = arith.constant 0 : i32
    return %arg0, %c0_i32 : i32, i32
  }
  func.func @transform_1(%arg0: i32) -> (i32, i32) {
    %c0_i32 = arith.constant 0 : i32
    %c0_i32_0 = arith.constant 0 : i32
    %c0_i32_1 = arith.constant 0 : i32
    return %c0_i32, %c0_i32_0 : i32, i32
  }
  func.func @transform_2(%arg0: i32) -> (i32, i32) {
    %c0_i32 = arith.constant 0 : i32
    %c0_i32_0 = arith.constant 0 : i32
    %c0_i32_1 = arith.constant 0 : i32
    return %c0_i32, %c0_i32_0 : i32, i32
  }
  func.func @transform_3(%arg0: i32) -> (i32, i32) {
    %c0_i32 = arith.constant 0 : i32
    %c0_i32_0 = arith.constant 0 : i32
    %c0_i32_1 = arith.constant 0 : i32
    return %c0_i32, %c0_i32_0 : i32, i32
  }
  func.func @transform_4(%arg0: i32) -> (i32, i32) {
    %c0_i32 = arith.constant 0 : i32
    %c0_i32_0 = arith.constant 0 : i32
    %c0_i32_1 = arith.constant 0 : i32
    return %c0_i32, %c0_i32_0 : i32, i32
  }
  func.func @transform_5(%arg0: i32) -> (i32, i32) {
    %c0_i32 = arith.constant 0 : i32
    %c0_i32_0 = arith.constant 0 : i32
    return %arg0, %c0_i32 : i32, i32
  }
}

module attributes {stable_mosaic.version = 11 : i64} {
  func.func @adapter_kernel(%arg0: i32, %arg1: memref<8x128xf32, #tpu.memory_space<vmem>>, %arg2: memref<128x128xf32, #tpu.memory_space<vmem>>, %arg3: memref<1x128xf32, #tpu.memory_space<vmem>>, %arg4: memref<128x128xf32, #tpu.memory_space<vmem>>, %arg5: memref<1x128xf32, #tpu.memory_space<vmem>>, %arg6: memref<8x128xf32, #tpu.memory_space<vmem>>) attributes {dimension_semantics = [#tpu.dimension_semantics<parallel>], iteration_bounds = array<i64: 2>, scalar_prefetch = 0 : i64, scratch_operands = 0 : i64, tpu.core_type = #tpu.core_type<tc>, window_params = [{transform_indices = @transform_0, window_bounds = array<i64: 8, 128>}, {pipeline_mode = #tpu.pipeline_mode<synchronous>, transform_indices = @transform_1, window_bounds = array<i64: 128, 128>}, {pipeline_mode = #tpu.pipeline_mode<synchronous>, transform_indices = @transform_2, window_bounds = array<i64: 1, 128>}, {pipeline_mode = #tpu.pipeline_mode<synchronous>, transform_indices = @transform_3, window_bounds = array<i64: 128, 128>}, {pipeline_mode = #tpu.pipeline_mode<synchronous>, transform_indices = @transform_4, window_bounds = array<i64: 1, 128>}, {transform_indices = @transform_5, window_bounds = array<i64: 8, 128>}]} {
    %c0 = arith.constant 0 : index
    %c0_0 = arith.constant 0 : index
    %0 = vector.load %arg1[%c0, %c0_0] : memref<8x128xf32, #tpu.memory_space<vmem>>, vector<8x128xf32>
    %c0_1 = arith.constant 0 : index
    %c0_2 = arith.constant 0 : index
    %1 = vector.load %arg2[%c0_1, %c0_2] : memref<128x128xf32, #tpu.memory_space<vmem>>, vector<128x128xf32>
    %cst = arith.constant dense<0.000000e+00> : vector<8x128xf32>
    %2 = tpu.matmul %0, %1, %cst {dimension_numbers = #tpu.dot_dimension_numbers<[1], [0], [0], [1], [0, 0, 1, 1], [], []>} : vector<8x128xf32>, vector<128x128xf32>, vector<8x128xf32> -> vector<8x128xf32>
    %c0_3 = arith.constant 0 : index
    %c0_4 = arith.constant 0 : index
    %3 = vector.load %arg3[%c0_3, %c0_4] : memref<1x128xf32, #tpu.memory_space<vmem>>, vector<1x128xf32>
    %4 = vector.broadcast %3 : vector<1x128xf32> to vector<8x128xf32>
    %5 = arith.addf %2, %4 : vector<8x128xf32>
    %cst_5 = arith.constant 0.000000e+00 : f32
    %6 = vector.broadcast %cst_5 : f32 to vector<8x128xf32>
    %7 = arith.maximumf %5, %6 : vector<8x128xf32>
    %c0_6 = arith.constant 0 : index
    %c0_7 = arith.constant 0 : index
    %8 = vector.load %arg4[%c0_6, %c0_7] : memref<128x128xf32, #tpu.memory_space<vmem>>, vector<128x128xf32>
    %cst_8 = arith.constant dense<0.000000e+00> : vector<8x128xf32>
    %9 = tpu.matmul %7, %8, %cst_8 {dimension_numbers = #tpu.dot_dimension_numbers<[1], [0], [0], [1], [0, 0, 1, 1], [], []>} : vector<8x128xf32>, vector<128x128xf32>, vector<8x128xf32> -> vector<8x128xf32>
    %c0_9 = arith.constant 0 : index
    %c0_10 = arith.constant 0 : index
    %10 = vector.load %arg5[%c0_9, %c0_10] : memref<1x128xf32, #tpu.memory_space<vmem>>, vector<1x128xf32>
    %11 = vector.broadcast %10 : vector<1x128xf32> to vector<8x128xf32>
    %12 = arith.addf %9, %11 : vector<8x128xf32>
    %13 = arith.addf %12, %0 : vector<8x128xf32>
    %c0_11 = arith.constant 0 : index
    %c0_12 = arith.constant 0 : index
    %14 = vector.load %arg6[%c0_11, %c0_12] : memref<8x128xf32, #tpu.memory_space<vmem>>, vector<8x128xf32>
    tpu.vector_store %arg6[%c0_11, %c0_12], %13 {strides = array<i32>} : memref<8x128xf32, #tpu.memory_space<vmem>>, vector<8x128xf32>,
    return
  }
  func.func @transform_0(%arg0: i32) -> (i32, i32) {
    %c0_i32 = arith.constant 0 : i32
    %c0_i32_0 = arith.constant 0 : i32
    return %arg0, %c0_i32 : i32, i32
  }
  func.func @transform_1(%arg0: i32) -> (i32, i32) {
    %c0_i32 = arith.constant 0 : i32
    %c0_i32_0 = arith.constant 0 : i32
    %c0_i32_1 = arith.constant 0 : i32
    return %c0_i32, %c0_i32_0 : i32, i32
  }
  func.func @transform_2(%arg0: i32) -> (i32, i32) {
    %c0_i32 = arith.constant 0 : i32
    %c0_i32_0 = arith.constant 0 : i32
    %c0_i32_1 = arith.constant 0 : i32
    return %c0_i32, %c0_i32_0 : i32, i32
  }
  func.func @transform_3(%arg0: i32) -> (i32, i32) {
    %c0_i32 = arith.constant 0 : i32
    %c0_i32_0 = arith.constant 0 : i32
    %c0_i32_1 = arith.constant 0 : i32
    return %c0_i32, %c0_i32_0 : i32, i32
  }
  func.func @transform_4(%arg0: i32) -> (i32, i32) {
    %c0_i32 = arith.constant 0 : i32
    %c0_i32_0 = arith.constant 0 : i32
    %c0_i32_1 = arith.constant 0 : i32
    return %c0_i32, %c0_i32_0 : i32, i32
  }
  func.func @transform_5(%arg0: i32) -> (i32, i32) {
    %c0_i32 = arith.constant 0 : i32
    %c0_i32_0 = arith.constant 0 : i32
    return %arg0, %c0_i32 : i32, i32
  }
}

</mosaic_0001>

<bundles_post_ra>
// kernel: tpu_custom_call.1
= control target key start
LH: loop header
LB: loop body
LE: loop exit
PB: predicated region body
PF: predicated region fallthrough
CT: control target
= control target key end

     0   :  { %10 = vsyncpa [#allocation3], 0  ;;  %s905_s0 = inlined_call_operand.hbm [shape: f32[16,128], index: 0, kind: input, shape index: {}, may-alias: {0,5}]   ;;  %s906_s1 = inlined_call_operand.hbm [shape: f32[128,128], index: 1, kind: input, shape index: {}]   ;;  %s907_s2 = inlined_call_operand.vmem [shape: f32[1,128], index: 2, kind: input, shape index: {}]   ;;  %s908_s3 = inlined_call_operand.hbm [shape: f32[128,128], index: 3, kind: input, shape index: {}]   ;;  %s909_s4 = inlined_call_operand.vmem [shape: f32[1,128], index: 4, kind: input, shape index: {}]   ;;  %s910_s5 = inlined_call_operand.hbm [shape: f32[16,128], index: 5, kind: output, shape index: {}, may-alias: {0,5}]  }
   0x1   :  { %12 = vsyncpa [#allocation3 + $0x1], 0 }
   0x2   :  { %13 = vsyncpa [#allocation6], 0 }
   0x3   :  { %14 = vsyncpa [#allocation4], 0 }
   0x4   :  { %16 = vsyncpa [#allocation4 + $0x1], 0  ;;  %s747_s18 = smov 0   ;;  %s749_s19 = smov 0  }
   0x5   :  { %s751_s20 = smov 0   ;;  %s753_s21 = smov 0  }
   0x6 LB: > { %s174_s24 = sshll.u32 %s906_s1, 4  ;;  %s771_s25 = sadd.s32 4294967295, %s711_s21   ;;  %s711_s21 = sphi %s753_s21, %s921_s21   ;;  %s707_s20 = sphi %s751_s20, %s920_s20   ;;  %s703_s19 = sphi %s749_s19, %s919_s19   ;;  %s699_s18 = sphi %s747_s18, %s918_s18   ;;  %s175_s24 = int_to_ptr.hbm [resolvable:$true] %s174_s24 }
   0x7   : > { %p465_p0 = scmp.ge.s32.totalorder %s711_s21, 1  ;;  %p43_p1 = scmp.eq.s32.totalorder %s771_s25, 0 }
   0x8   : > { %p163_p2 = scmp.lt.s32.totalorder %s711_s21, 3  ;;  %s713_s27 = smov [#allocation5]  }
   0x9   : > { %s176_s28 = sshll.u32 %s713_s27, 4  ;;  %s191_s6 = sshll.u32 %s908_s3, 4  ;;  %s177_s28 = int_to_ptr.vmem [resolvable:$true] %s176_s28  ;;  %s192_s6 = int_to_ptr.hbm [resolvable:$true] %s191_s6 }
   0xa   : > { %p776_p3 = pnand %p465_p0, %p163_p2  ;;  %s714_s7 = smov [#allocation7]  }
   0xb   : > { %s193_s8 = sshll.u32 %s714_s7, 4  ;;  %s715_s9 = smov 128   ;;  %s194_s8 = int_to_ptr.vmem [resolvable:$true] %s193_s8 }
   0xc   : > { %p492_p4 = pneg %p776_p3  ;;  %s716_s10 = smov 8  }
   0xd   : > { %s464_s11 = sadd.s32 4294967294, %s711_s21   ;;  %s790_s12 = sadd.s32 1, %s711_s21  }
   0xe   : > { %p493_p6 = pnand %p492_p4, %p43_p1  ;;  %s26_s13 = ssub.s32 %s711_s21, %s790_s12 }
   0xf   : > { %s29_s14 = sadd.s32 1, %s707_s20  ;;  %p27_p7 = scmp.eq.s32.totalorder %s26_s13, 0 }
  0x10   : > { %495 = dma.hbm_to_vmem [thread:$0]  (!%p493_p6), %s175_s24, 2048, %s177_s28, [#allocation6], %s715_s9, %s715_s9, %s716_s10  }
  0x11   : > { %498 = dma.hbm_to_vmem [thread:$0]  (!%p493_p6), %s192_s6, 2048, %s194_s8, [#allocation6], %s715_s9, %s715_s9, %s716_s10  }
  0x12   : > { %p36_p8 = scmp.ne.s32.totalorder %s707_s20, %s703_s19  ;;  %p37_p9 = scmp.eq.s32.totalorder %s711_s21, 0 }
  0x13   : > { %p42_p10 = scmp.ne.s32.totalorder %s703_s19, %s699_s18  ;;  %p150_p13 = scmp.eq.s32.totalorder %s771_s25, 1 }
  0x14   : > { %s801_s15 = scalar_select %p27_p7, %s707_s20, %s29_s14  }
  0x15   : > { %p803_p11 = por %p37_p9, %p36_p8  ;;  %p809_p12 = por %p43_p1, %p42_p10 }
  0x16   : > { %p156_p0 = scmp.eq.s32.totalorder %s464_s11, 1  ;;  %p509_p2 = scmp.lt.s32.totalorder %s711_s21, 2 }
  0x17   : > { %s210_s22 = sand.u32 1, %s707_s20   ;;  %p816_p4 = por %p150_p13, %p36_p8 }
  0x18   : > { %p820_p6 = por %p156_p0, %p42_p10  ;;  %s469_s27 = sshll.u32 %s210_s22, 3 }
  0x19   : > { %s470_s28 = sshll.u32 %s711_s21, 3  ;;  %s214_s7 = scalar_lea.vmem [#allocation2], %s469_s27 }
  0x1a   : > { %s218_s6 = scalar_lea.hbm %s905_s0, %s470_s28  ;;  %s222_s8 = sshll.u32 %s214_s7, 4  ;;  %s223_s8 = int_to_ptr.vmem [resolvable:$true] %s222_s8 }
  0x1b   : > { %s220_s9 = sshll.u32 %s218_s6, 4  ;;  %p830_p7 = pnand %p509_p2, %p803_p11  ;;  %s221_s9 = int_to_ptr.hbm [resolvable:$true] %s220_s9 }
  0x1c   : > { %s211_s11 = scalar_lea.sflag [#allocation3], %s210_s22  ;;  %s611_s13 = sshra.s32 %s221_s9, 4  ;;  %s612_s13 = int_to_ptr.hbm [resolvable:$true] %s611_s13 }
  0x1d   : > { %s613_s14 = scalar_lea.hbm %s612_s13, 8  ;;  %p615_p9 = pneg %p830_p7 }
  0x1e   : > { %p614_p8 = scmp.ne.s32.totalorder %s612_s13, %s613_s14  ;;  %s618_s29 = scalar_lea.hbm %s905_s0, 16 }
  0x1f   : > { %p619_p11 = scmp.lt.s32.totalorder %s612_s13, %s905_s0  ;;  %p620_p0 = scmp.lt.s32.totalorder %s618_s29, %s613_s14 }
  0x20   : > { %p616_p10 = pnand %p615_p9, %p614_p8 }
  0x21   : > { %p621_p2 = por %p620_p0, %p619_p11 }
  0x22   : > { %p617_p13 = pneg %p616_p10 }
  0x24   : > { %p622_p5 = pnand %p621_p2, %p617_p13 }
  0x26   : > { %625 = shalt.err (!%p622_p5)
}
  0x27   : > { %502 = dma.hbm_to_vmem [thread:$0]  (!%p830_p7), %s221_s9, 128, %s223_s8, %s211_s11  }
  0x28   : > { %231 = sbr.rel (%p776_p3) target bundleno = 343 (0x157), region = 40  ;;  %s847_s22 = sand.u32 (!%p776_p3), 1, %s703_s19  }
  0x29   : > { %s472_s6 = sshll.u32 (!%p776_p3), %s847_s22, 3  ;;  %s234_s7 = scalar_lea.sflag (!%p776_p3), [#allocation3], %s847_s22 }
  0x2a   : > { %s853_s13 = scalar_lea.vmem (!%p776_p3), [#allocation2], %s472_s6 }
  0x2d   : > { %686 = dma.done.wait (%p809_p12), %s234_s7, 128  }
  0x2e   : > { %688 = vsyncadd (%p809_p12), %s234_s7, 4294967168 }
  0x2f   : > { %690 = dma.done.wait (%p43_p1), [#allocation6], 4096  }
  0x30   : > { %692 = vsyncadd (%p43_p1), [#allocation6], 4294963200  ;;  %v291_v0 = vld [vmem:[#allocation5 + $0x78] sm:$0xff]  ;;  %v290_v1 = vld [vmem:[#allocation5 + $0x70] sm:$0xff]  ;;  %s477_s8 = sshll.u32 %s771_s25, 3  ;;  %s274_s28 = scalar_lea.vmem [#allocation8], %s472_s6 }
  0x31   : > { %296 = vmatpush.msra.mxu0 %v291_v0  ;;  %v289_v2 = vld [vmem:[#allocation5 + $0x68] sm:$0xff]  ;;  %v288_v3 = vld [vmem:[#allocation5 + $0x60] sm:$0xff]  ;;  %v332_v4 = vld [vmem:[#allocation7 + $0x78] sm:$0xff]  ;;  %s370_s27 = scalar_lea.hbm %s910_s5, %s477_s8  ;;  %s372_s29 = sshll.u32 %s274_s28, 4  ;;  %s373_s29 = int_to_ptr.vmem [resolvable:$true] %s372_s29 }
  0x32   : > { %v287_v5 = vld [vmem:[#allocation5 + $0x58] sm:$0xff]  ;;  %337 = vmatpush.msra.mxu1 %v332_v4  ;;  %v331_v6 = vld [vmem:[#allocation7 + $0x70] sm:$0xff]  ;;  %v330_v7 = vld [vmem:[#allocation7 + $0x68] sm:$0xff]  ;;  %s374_s30 = sshll.u32 %s370_s27, 4  ;;  %s360_s25 = scalar_lea.sflag [#allocation4], %s847_s22  ;;  %s375_s30 = int_to_ptr.hbm [resolvable:$true] %s374_s30 }
  0x33   : > { %297 = vmatpush.msra.mxu0 %v290_v1  ;;  %v286_v8 = vld [vmem:[#allocation5 + $0x50] sm:$0xff]  ;;  %v329_v9 = vld [vmem:[#allocation7 + $0x60] sm:$0xff]  ;;  %v285_v10 = vld [vmem:[#allocation5 + $0x48] sm:$0xff]  ;;  %s655_s16 = sshra.s32 %s375_s30, 4  ;;  %s661_s17 = scalar_lea.hbm %s910_s5, 16  ;;  %s656_s16 = int_to_ptr.hbm [resolvable:$true] %s655_s16 }
  0x34   : > { %338 = vmatpush.msra.mxu1 %v331_v6  ;;  %v328_v11 = vld [vmem:[#allocation7 + $0x58] sm:$0xff]  ;;  %v284_v12 = vld [vmem:[#allocation5 + $0x40] sm:$0xff]  ;;  %v327_v13 = vld [vmem:[#allocation7 + $0x50] sm:$0xff]  ;;  %s657_s7 = scalar_lea.hbm %s656_s16, 8  ;;  %p662_p12 = scmp.lt.s32.totalorder %s656_s16, %s910_s5 }
  0x35   : > { %298 = vmatpush.msra.mxu0 %v289_v2  ;;  %v283_v14 = vld [vmem:[#allocation5 + $0x38] sm:$0xff]  ;;  %v326_v15 = vld [vmem:[#allocation7 + $0x48] sm:$0xff]  ;;  %v282_v16 = vld [vmem:[#allocation5 + $0x30] sm:$0xff]  ;;  %p658_p1 = scmp.ne.s32.totalorder %s656_s16, %s657_s7  ;;  %p663_p7 = scmp.lt.s32.totalorder %s661_s17, %s657_s7 }
  0x36   : > { %339 = vmatpush.msra.mxu1 %v330_v7  ;;  %v325_v17 = vld [vmem:[#allocation7 + $0x40] sm:$0xff]  ;;  %v281_v18 = vld [vmem:[#allocation5 + $0x28] sm:$0xff]  ;;  %v324_v19 = vld [vmem:[#allocation7 + $0x38] sm:$0xff] }
  0x37   : > { %299 = vmatpush.msra.mxu0 %v288_v3  ;;  %v280_v20 = vld [vmem:[#allocation5 + $0x20] sm:$0xff]  ;;  %v323_v21 = vld [vmem:[#allocation7 + $0x30] sm:$0xff]  ;;  %v279_v22 = vld [vmem:[#allocation5 + $0x18] sm:$0xff]  ;;  %p659_p3 = pnand %p658_p1, %p816_p4  ;;  %p664_p8 = por %p663_p7, %p662_p12 }
  0x38   : > { %340 = vmatpush.msra.mxu1 %v329_v9  ;;  %v322_v23 = vld [vmem:[#allocation7 + $0x28] sm:$0xff]  ;;  %v278_v24 = vld [vmem:[#allocation5 + $0x10] sm:$0xff]  ;;  %v321_v25 = vld [vmem:[#allocation7 + $0x20] sm:$0xff] }
  0x39   : > { %300 = vmatpush.msra.mxu0 %v287_v5  ;;  %v277_v26 = vld [vmem:[#allocation5 + $0x8] sm:$0xff]  ;;  %v320_v27 = vld [vmem:[#allocation7 + $0x18] sm:$0xff]  ;;  %v276_v28 = vld [vmem:[#allocation5] sm:$0xff]  ;;  %p660_p5 = pneg %p659_p3 }
  0x3a   : > { %341 = vmatpush.msra.mxu1 %v328_v11  ;;  %v275_v29 = vld [vmem:[%s853_s13] sm:$0xff]  ;;  %v318_v31 = vld [vmem:[#allocation7 + $0x8] sm:$0xff]  ;;  %v317_v32 = vld [vmem:[#allocation7] sm:$0xff] }
  0x3b   : > { %301 = vmatpush.msra.mxu0 %v286_v8  ;;  %v319_v30 = vld [vmem:[#allocation7 + $0x10] sm:$0xff]  ;;  %p665_p9 = pnand %p664_p8, %p660_p5 }
  0x3c   : > { %342 = vmatpush.msra.mxu1 %v327_v13  ;;  %v549_v33 = vld [vmem:[%s907_s2] ss:$0 sm:$0xff] }
  0x3d   : > { %302 = vmatpush.msra.mxu0 %v285_v10  ;;  %v550_v37 = vld [vmem:[%s909_s4] ss:$0 sm:$0xff] }
  0x3e   : > { %343 = vmatpush.msra.mxu1 %v326_v15 }
  0x3f   : > { %303 = vmatpush.msra.mxu0 %v284_v12 }
  0x40   : > { %344 = vmatpush.msra.mxu1 %v325_v17 }
  0x41   : > { %304 = vmatpush.msra.mxu0 %v283_v14 }
  0x42   : > { %345 = vmatpush.msra.mxu1 %v324_v19 }
  0x43   : > { %305 = vmatpush.msra.mxu0 %v282_v16 }
  0x44   : > { %346 = vmatpush.msra.mxu1 %v323_v21 }
  0x45   : > { %306 = vmatpush.msra.mxu0 %v281_v18 }
  0x46   : > { %347 = vmatpush.msra.mxu1 %v322_v23 }
  0x47   : > { %307 = vmatpush.msra.mxu0 %v280_v20 }
  0x48   : > { %348 = vmatpush.msra.mxu1 %v321_v25 }
  0x49   : > { %308 = vmatpush.msra.mxu0 %v279_v22 }
  0x4a   : > { %349 = vmatpush.msra.mxu1 %v320_v27 }
  0x4b   : > { %309 = vmatpush.msra.mxu0 %v278_v24 }
  0x4c   : > { %350 = vmatpush.msra.mxu1 %v319_v30 }
  0x4d   : > { %310 = vmatpush.msra.mxu0 %v277_v26 }
  0x4e   : > { %351 = vmatpush.msra.mxu1 %v318_v31 }
  0x4f   : > { %311 = vmatpush.msra.mxu0 %v276_v28 }
  0x50   : > { %312 = vmatmul.f32.vlgmr.msra.gmra.mxu0 %v275_v29  ;;  %352 = vmatpush.msra.mxu1 %v317_v32 }
  0xcd   : > { %v313_v34 = vpop.f32.mrf.mxu0 }
  0xce   : > { %v314_v35 = vadd.f32 %v549_v33, %v313_v34 }
  0xd0   : > { %v316_v36 = vmax.f32 %v314_v35, 0.0 }
  0xd2   : > { %353 = vmatmul.f32.vlgmr.msra.gmra.mxu1 %v316_v36 }
 0x14f   : > { %v354_v38 = vpop.f32.mrf.mxu1 }
 0x150   : > { %v355_v39 = vadd.f32 %v550_v37, %v354_v38 }
 0x152   : > { %v357_v40 = vadd.f32 %v355_v39, %v275_v29 }
 0x154   : > { %358 = vst [vmem:[%s274_s28] sm:$0xff] %v357_v40 }
 0x155   : > { %668 = shalt.err (!%p665_p9)
}
 0x156   : > { %490 = dma.vmem_to_hbm [thread:$0]  (%p816_p4), %s373_s29, 128, %s375_s30, %s360_s25  }
 0x157 PF: > { %s386_s22 = sand.u32 1, %s699_s18   ;;  %p917_p10 = scmp.ge.s32.totalorder %s711_s21, 2 }
 0x158   : > { %s387_s9 = scalar_lea.sflag [#allocation4], %s386_s22 }
 0x159   : > { %p504_p13 = pnand %p917_p10, %p820_p6 }
 0x15b   : > { %p505_p11 = pneg %p504_p13 }
 0x15d   : > { %694 = dma.done.wait (%p505_p11), %s387_s9, 128  }
 0x15e   : > { %696 = vsyncadd (%p505_p11), %s387_s9, 4294967168  ;;  %p19_p0 = scmp.ge.s32.totalorder %s790_s12, 4   ;;  %s918_s18 = smov %s703_s19 }
 0x15f   : > { %s919_s19 = smov %s707_s20  ;;  %s920_s20 = smov %s801_s15 }
 0x160   : > { %s921_s21 = smov %s790_s12  ;;  %21 = sbr.rel (!%p19_p0) target bundleno = 6 (0x6), region = 93 }
 0x165   :  { %393 = vsyncpa [#allocation3], 1 }
 0x166   :  { %395 = vsyncpa [#allocation3 + $0x1], 1 }
 0x167   :  { %396 = vsyncpa [#allocation6], 1 }
 0x168   :  { %397 = vsyncpa [#allocation4], 1 }
 0x169   :  { %399 = vsyncpa [#allocation4 + $0x1], 1 }

// kernel: tpu_custom_call.1
= control target key start
LH: loop header
LB: loop body
LE: loop exit
PB: predicated region body
PF: predicated region fallthrough
CT: control target
= control target key end

     0   :  { %10 = vsyncpa [#allocation3], 0  ;;  %s905_s0 = inlined_call_operand.hbm [shape: f32[16,128], index: 0, kind: input, shape index: {}, may-alias: {0,5}]   ;;  %s906_s1 = inlined_call_operand.hbm [shape: f32[128,128], index: 1, kind: input, shape index: {}]   ;;  %s907_s2 = inlined_call_operand.vmem [shape: f32[1,128], index: 2, kind: input, shape index: {}]   ;;  %s908_s3 = inlined_call_operand.hbm [shape: f32[128,128], index: 3, kind: input, shape index: {}]   ;;  %s909_s4 = inlined_call_operand.vmem [shape: f32[1,128], index: 4, kind: input, shape index: {}]   ;;  %s910_s5 = inlined_call_operand.hbm [shape: f32[16,128], index: 5, kind: output, shape index: {}, may-alias: {0,5}]  }
   0x1   :  { %12 = vsyncpa [#allocation3 + $0x1], 0 }
   0x2   :  { %13 = vsyncpa [#allocation6], 0 }
   0x3   :  { %14 = vsyncpa [#allocation4], 0 }
   0x4   :  { %16 = vsyncpa [#allocation4 + $0x1], 0  ;;  %s747_s18 = smov 0   ;;  %s749_s19 = smov 0  }
   0x5   :  { %s751_s20 = smov 0   ;;  %s753_s21 = smov 0  }
   0x6 LB: > { %s174_s24 = sshll.u32 %s906_s1, 4  ;;  %s771_s25 = sadd.s32 4294967295, %s711_s21   ;;  %s711_s21 = sphi %s753_s21, %s921_s21   ;;  %s707_s20 = sphi %s751_s20, %s920_s20   ;;  %s703_s19 = sphi %s749_s19, %s919_s19   ;;  %s699_s18 = sphi %s747_s18, %s918_s18   ;;  %s175_s24 = int_to_ptr.hbm [resolvable:$true] %s174_s24 }
   0x7   : > { %p465_p0 = scmp.ge.s32.totalorder %s711_s21, 1  ;;  %p43_p1 = scmp.eq.s32.totalorder %s771_s25, 0 }
   0x8   : > { %p163_p2 = scmp.lt.s32.totalorder %s711_s21, 3  ;;  %s713_s27 = smov [#allocation5]  }
   0x9   : > { %s176_s28 = sshll.u32 %s713_s27, 4  ;;  %s191_s6 = sshll.u32 %s908_s3, 4  ;;  %s177_s28 = int_to_ptr.vmem [resolvable:$true] %s176_s28  ;;  %s192_s6 = int_to_ptr.hbm [resolvable:$true] %s191_s6 }
   0xa   : > { %p776_p3 = pnand %p465_p0, %p163_p2  ;;  %s714_s7 = smov [#allocation7]  }
   0xb   : > { %s193_s8 = sshll.u32 %s714_s7, 4  ;;  %s715_s9 = smov 128   ;;  %s194_s8 = int_to_ptr.vmem [resolvable:$true] %s193_s8 }
   0xc   : > { %p492_p4 = pneg %p776_p3  ;;  %s716_s10 = smov 8  }
   0xd   : > { %s464_s11 = sadd.s32 4294967294, %s711_s21   ;;  %s790_s12 = sadd.s32 1, %s711_s21  }
   0xe   : > { %p493_p6 = pnand %p492_p4, %p43_p1  ;;  %s26_s13 = ssub.s32 %s711_s21, %s790_s12 }
   0xf   : > { %s29_s14 = sadd.s32 1, %s707_s20  ;;  %p27_p7 = scmp.eq.s32.totalorder %s26_s13, 0 }
  0x10   : > { %495 = dma.hbm_to_vmem [thread:$0]  (!%p493_p6), %s175_s24, 2048, %s177_s28, [#allocation6], %s715_s9, %s715_s9, %s716_s10  }
  0x11   : > { %498 = dma.hbm_to_vmem [thread:$0]  (!%p493_p6), %s192_s6, 2048, %s194_s8, [#allocation6], %s715_s9, %s715_s9, %s716_s10  }
  0x12   : > { %p36_p8 = scmp.ne.s32.totalorder %s707_s20, %s703_s19  ;;  %p37_p9 = scmp.eq.s32.totalorder %s711_s21, 0 }
  0x13   : > { %p42_p10 = scmp.ne.s32.totalorder %s703_s19, %s699_s18  ;;  %p150_p13 = scmp.eq.s32.totalorder %s771_s25, 1 }
  0x14   : > { %s801_s15 = scalar_select %p27_p7, %s707_s20, %s29_s14  }
  0x15   : > { %p803_p11 = por %p37_p9, %p36_p8  ;;  %p809_p12 = por %p43_p1, %p42_p10 }
  0x16   : > { %p156_p0 = scmp.eq.s32.totalorder %s464_s11, 1  ;;  %p509_p2 = scmp.lt.s32.totalorder %s711_s21, 2 }
  0x17   : > { %s210_s22 = sand.u32 1, %s707_s20   ;;  %p816_p4 = por %p150_p13, %p36_p8 }
  0x18   : > { %p820_p6 = por %p156_p0, %p42_p10  ;;  %s469_s27 = sshll.u32 %s210_s22, 3 }
  0x19   : > { %s470_s28 = sshll.u32 %s711_s21, 3  ;;  %s214_s7 = scalar_lea.vmem [#allocation2], %s469_s27 }
  0x1a   : > { %s218_s6 = scalar_lea.hbm %s905_s0, %s470_s28  ;;  %s222_s8 = sshll.u32 %s214_s7, 4  ;;  %s223_s8 = int_to_ptr.vmem [resolvable:$true] %s222_s8 }
  0x1b   : > { %s220_s9 = sshll.u32 %s218_s6, 4  ;;  %p830_p7 = pnand %p509_p2, %p803_p11  ;;  %s221_s9 = int_to_ptr.hbm [resolvable:$true] %s220_s9 }
  0x1c   : > { %s211_s11 = scalar_lea.sflag [#allocation3], %s210_s22  ;;  %s611_s13 = sshra.s32 %s221_s9, 4  ;;  %s612_s13 = int_to_ptr.hbm [resolvable:$true] %s611_s13 }
  0x1d   : > { %s613_s14 = scalar_lea.hbm %s612_s13, 8  ;;  %p615_p9 = pneg %p830_p7 }
  0x1e   : > { %p614_p8 = scmp.ne.s32.totalorder %s612_s13, %s613_s14  ;;  %s618_s29 = scalar_lea.hbm %s905_s0, 16 }
  0x1f   : > { %p619_p11 = scmp.lt.s32.totalorder %s612_s13, %s905_s0  ;;  %p620_p0 = scmp.lt.s32.totalorder %s618_s29, %s613_s14 }
  0x20   : > { %p616_p10 = pnand %p615_p9, %p614_p8 }
  0x21   : > { %p621_p2 = por %p620_p0, %p619_p11 }
  0x22   : > { %p617_p13 = pneg %p616_p10 }
  0x24   : > { %p622_p5 = pnand %p621_p2, %p617_p13 }
  0x26   : > { %625 = shalt.err (!%p622_p5)
}
  0x27   : > { %502 = dma.hbm_to_vmem [thread:$0]  (!%p830_p7), %s221_s9, 128, %s223_s8, %s211_s11  }
  0x28   : > { %231 = sbr.rel (%p776_p3) target bundleno = 343 (0x157), region = 40  ;;  %s847_s22 = sand.u32 (!%p776_p3), 1, %s703_s19  }
  0x29   : > { %s472_s6 = sshll.u32 (!%p776_p3), %s847_s22, 3  ;;  %s234_s7 = scalar_lea.sflag (!%p776_p3), [#allocation3], %s847_s22 }
  0x2a   : > { %s853_s13 = scalar_lea.vmem (!%p776_p3), [#allocation2], %s472_s6 }
  0x2d   : > { %686 = dma.done.wait (%p809_p12), %s234_s7, 128  }
  0x2e   : > { %688 = vsyncadd (%p809_p12), %s234_s7, 4294967168 }
  0x2f   : > { %690 = dma.done.wait (%p43_p1), [#allocation6], 4096  }
  0x30   : > { %692 = vsyncadd (%p43_p1), [#allocation6], 4294963200  ;;  %v291_v0 = vld [vmem:[#allocation5 + $0x78] sm:$0xff]  ;;  %v290_v1 = vld [vmem:[#allocation5 + $0x70] sm:$0xff]  ;;  %s477_s8 = sshll.u32 %s771_s25, 3  ;;  %s274_s28 = scalar_lea.vmem [#allocation8], %s472_s6 }
  0x31   : > { %296 = vmatpush.msra.mxu0 %v291_v0  ;;  %v289_v2 = vld [vmem:[#allocation5 + $0x68] sm:$0xff]  ;;  %v288_v3 = vld [vmem:[#allocation5 + $0x60] sm:$0xff]  ;;  %v332_v4 = vld [vmem:[#allocation7 + $0x78] sm:$0xff]  ;;  %s370_s27 = scalar_lea.hbm %s910_s5, %s477_s8  ;;  %s372_s29 = sshll.u32 %s274_s28, 4  ;;  %s373_s29 = int_to_ptr.vmem [resolvable:$true] %s372_s29 }
  0x32   : > { %v287_v5 = vld [vmem:[#allocation5 + $0x58] sm:$0xff]  ;;  %337 = vmatpush.msra.mxu1 %v332_v4  ;;  %v331_v6 = vld [vmem:[#allocation7 + $0x70] sm:$0xff]  ;;  %v330_v7 = vld [vmem:[#allocation7 + $0x68] sm:$0xff]  ;;  %s374_s30 = sshll.u32 %s370_s27, 4  ;;  %s360_s25 = scalar_lea.sflag [#allocation4], %s847_s22  ;;  %s375_s30 = int_to_ptr.hbm [resolvable:$true] %s374_s30 }
  0x33   : > { %297 = vmatpush.msra.mxu0 %v290_v1  ;;  %v286_v8 = vld [vmem:[#allocation5 + $0x50] sm:$0xff]  ;;  %v329_v9 = vld [vmem:[#allocation7 + $0x60] sm:$0xff]  ;;  %v285_v10 = vld [vmem:[#allocation5 + $0x48] sm:$0xff]  ;;  %s655_s16 = sshra.s32 %s375_s30, 4  ;;  %s661_s17 = scalar_lea.hbm %s910_s5, 16  ;;  %s656_s16 = int_to_ptr.hbm [resolvable:$true] %s655_s16 }
  0x34   : > { %338 = vmatpush.msra.mxu1 %v331_v6  ;;  %v328_v11 = vld [vmem:[#allocation7 + $0x58] sm:$0xff]  ;;  %v284_v12 = vld [vmem:[#allocation5 + $0x40] sm:$0xff]  ;;  %v327_v13 = vld [vmem:[#allocation7 + $0x50] sm:$0xff]  ;;  %s657_s7 = scalar_lea.hbm %s656_s16, 8  ;;  %p662_p12 = scmp.lt.s32.totalorder %s656_s16, %s910_s5 }
  0x35   : > { %298 = vmatpush.msra.mxu0 %v289_v2  ;;  %v283_v14 = vld [vmem:[#allocation5 + $0x38] sm:$0xff]  ;;  %v326_v15 = vld [vmem:[#allocation7 + $0x48] sm:$0xff]  ;;  %v282_v16 = vld [vmem:[#allocation5 + $0x30] sm:$0xff]  ;;  %p658_p1 = scmp.ne.s32.totalorder %s656_s16, %s657_s7  ;;  %p663_p7 = scmp.lt.s32.totalorder %s661_s17, %s657_s7 }
  0x36   : > { %339 = vmatpush.msra.mxu1 %v330_v7  ;;  %v325_v17 = vld [vmem:[#allocation7 + $0x40] sm:$0xff]  ;;  %v281_v18 = vld [vmem:[#allocation5 + $0x28] sm:$0xff]  ;;  %v324_v19 = vld [vmem:[#allocation7 + $0x38] sm:$0xff] }
  0x37   : > { %299 = vmatpush.msra.mxu0 %v288_v3  ;;  %v280_v20 = vld [vmem:[#allocation5 + $0x20] sm:$0xff]  ;;  %v323_v21 = vld [vmem:[#allocation7 + $0x30] sm:$0xff]  ;;  %v279_v22 = vld [vmem:[#allocation5 + $0x18] sm:$0xff]  ;;  %p659_p3 = pnand %p658_p1, %p816_p4  ;;  %p664_p8 = por %p663_p7, %p662_p12 }
  0x38   : > { %340 = vmatpush.msra.mxu1 %v329_v9  ;;  %v322_v23 = vld [vmem:[#allocation7 + $0x28] sm:$0xff]  ;;  %v278_v24 = vld [vmem:[#allocation5 + $0x10] sm:$0xff]  ;;  %v321_v25 = vld [vmem:[#allocation7 + $0x20] sm:$0xff] }
  0x39   : > { %300 = vmatpush.msra.mxu0 %v287_v5  ;;  %v277_v26 = vld [vmem:[#allocation5 + $0x8] sm:$0xff]  ;;  %v320_v27 = vld [vmem:[#allocation7 + $0x18] sm:$0xff]  ;;  %v276_v28 = vld [vmem:[#allocation5] sm:$0xff]  ;;  %p660_p5 = pneg %p659_p3 }
  0x3a   : > { %341 = vmatpush.msra.mxu1 %v328_v11  ;;  %v275_v29 = vld [vmem:[%s853_s13] sm:$0xff]  ;;  %v318_v31 = vld [vmem:[#allocation7 + $0x8] sm:$0xff]  ;;  %v317_v32 = vld [vmem:[#allocation7] sm:$0xff] }
  0x3b   : > { %301 = vmatpush.msra.mxu0 %v286_v8  ;;  %v319_v30 = vld [vmem:[#allocation7 + $0x10] sm:$0xff]  ;;  %p665_p9 = pnand %p664_p8, %p660_p5 }
  0x3c   : > { %342 = vmatpush.msra.mxu1 %v327_v13  ;;  %v549_v33 = vld [vmem:[%s907_s2] ss:$0 sm:$0xff] }
  0x3d   : > { %302 = vmatpush.msra.mxu0 %v285_v10  ;;  %v550_v37 = vld [vmem:[%s909_s4] ss:$0 sm:$0xff] }
  0x3e   : > { %343 = vmatpush.msra.mxu1 %v326_v15 }
  0x3f   : > { %303 = vmatpush.msra.mxu0 %v284_v12 }
  0x40   : > { %344 = vmatpush.msra.mxu1 %v325_v17 }
  0x41   : > { %304 = vmatpush.msra.mxu0 %v283_v14 }
  0x42   : > { %345 = vmatpush.msra.mxu1 %v324_v19 }
  0x43   : > { %305 = vmatpush.msra.mxu0 %v282_v16 }
  0x44   : > { %346 = vmatpush.msra.mxu1 %v323_v21 }
  0x45   : > { %306 = vmatpush.msra.mxu0 %v281_v18 }
  0x46   : > { %347 = vmatpush.msra.mxu1 %v322_v23 }
  0x47   : > { %307 = vmatpush.msra.mxu0 %v280_v20 }
  0x48   : > { %348 = vmatpush.msra.mxu1 %v321_v25 }
  0x49   : > { %308 = vmatpush.msra.mxu0 %v279_v22 }
  0x4a   : > { %349 = vmatpush.msra.mxu1 %v320_v27 }
  0x4b   : > { %309 = vmatpush.msra.mxu0 %v278_v24 }
  0x4c   : > { %350 = vmatpush.msra.mxu1 %v319_v30 }
  0x4d   : > { %310 = vmatpush.msra.mxu0 %v277_v26 }
  0x4e   : > { %351 = vmatpush.msra.mxu1 %v318_v31 }
  0x4f   : > { %311 = vmatpush.msra.mxu0 %v276_v28 }
  0x50   : > { %312 = vmatmul.f32.vlgmr.msra.gmra.mxu0 %v275_v29  ;;  %352 = vmatpush.msra.mxu1 %v317_v32 }
  0xcd   : > { %v313_v34 = vpop.f32.mrf.mxu0 }
  0xce   : > { %v314_v35 = vadd.f32 %v549_v33, %v313_v34 }
  0xd0   : > { %v316_v36 = vmax.f32 %v314_v35, 0.0 }
  0xd2   : > { %353 = vmatmul.f32.vlgmr.msra.gmra.mxu1 %v316_v36 }
 0x14f   : > { %v354_v38 = vpop.f32.mrf.mxu1 }
 0x150   : > { %v355_v39 = vadd.f32 %v550_v37, %v354_v38 }
 0x152   : > { %v357_v40 = vadd.f32 %v355_v39, %v275_v29 }
 0x154   : > { %358 = vst [vmem:[%s274_s28] sm:$0xff] %v357_v40 }
 0x155   : > { %668 = shalt.err (!%p665_p9)
}
 0x156   : > { %490 = dma.vmem_to_hbm [thread:$0]  (%p816_p4), %s373_s29, 128, %s375_s30, %s360_s25  }
 0x157 PF: > { %s386_s22 = sand.u32 1, %s699_s18   ;;  %p917_p10 = scmp.ge.s32.totalorder %s711_s21, 2 }
 0x158   : > { %s387_s9 = scalar_lea.sflag [#allocation4], %s386_s22 }
 0x159   : > { %p504_p13 = pnand %p917_p10, %p820_p6 }
 0x15b   : > { %p505_p11 = pneg %p504_p13 }
 0x15d   : > { %694 = dma.done.wait (%p505_p11), %s387_s9, 128  }
 0x15e   : > { %696 = vsyncadd (%p505_p11), %s387_s9, 4294967168  ;;  %p19_p0 = scmp.ge.s32.totalorder %s790_s12, 4   ;;  %s918_s18 = smov %s703_s19 }
 0x15f   : > { %s919_s19 = smov %s707_s20  ;;  %s920_s20 = smov %s801_s15 }
 0x160   : > { %s921_s21 = smov %s790_s12  ;;  %21 = sbr.rel (!%p19_p0) target bundleno = 6 (0x6), region = 93 }
 0x165   :  { %393 = vsyncpa [#allocation3], 1 }
 0x166   :  { %395 = vsyncpa [#allocation3 + $0x1], 1 }
 0x167   :  { %396 = vsyncpa [#allocation6], 1 }
 0x168   :  { %397 = vsyncpa [#allocation4], 1 }
 0x169   :  { %399 = vsyncpa [#allocation4 + $0x1], 1 }

</bundles_post_ra>
